<compile_context>
chip_gen: v7x
topology: tpu7x:2x2x1
jax: 0.10.0
libtpu: 0.0.40
codegen_flags: <defaults>
</compile_context>

<pallas_src>
import functools
import math

import jax
import jax.numpy as jnp
from jax.experimental import pallas as pl
from jax.experimental.pallas import tpu as pltpu


def _round_up(n, m):
    return ((n + m - 1) // m) * m


# ----------------------------------------------------------------------------
# Pallas kernel: one row-tile of the fused Highway forward.
#   x_ref : (bm, D)     input tile (native dtype)
#   w_ref : (D, 2D)     fused [W_proj.T | W_transform.T], bf16
#   b_ref : (1, 2D)     fused [b_proj  | b_transform ],   f32
#   o_ref : (bm, D)     output tile (native dtype)
# ----------------------------------------------------------------------------
def highway_kernel(x_ref, w_ref, b_ref, o_ref, *, d):
    x = x_ref[...]
    # Single MXU call producing both the projection and the transform gate.
    # bf16 operands, f32 accumulation.
    gates = jnp.dot(x.astype(w_ref.dtype), w_ref[...],
                    preferred_element_type=jnp.float32) + b_ref[...]
    # NOTE: these slices are free (lane-tile-aligned) only when D % 128 == 0.
    proj = jnp.maximum(gates[:, :d], 0.0)          # relu branch   (VPU)
    gate = jax.nn.sigmoid(gates[:, d:])            # transform gate (EUP)
    xf = x.astype(jnp.float32)
    o_ref[...] = (xf + gate * (proj - xf)).astype(o_ref.dtype)


def highway_forward(x, w_fused, b_fused, *, block_m=512):
    """x: (..., D); w_fused: (D, 2D) bf16; b_fused: (1, 2D) f32."""
    orig_shape = x.shape
    d = orig_shape[-1]
    xm = x.reshape(-1, d)                  # no dtype cast: stream native dtype
    m = xm.shape[0]

    # Row tile: multiple of 8 sublanes, capped at block_m; ragged last tile is
    # handled by Pallas (masked output store), so no wrapper pad/slice needed.
    bm = min(block_m, _round_up(m, 8))
    grid = (pl.cdiv(m, bm),)
    kernel = functools.partial(highway_kernel, d=d)

    out = pl.pallas_call(
        kernel,
        out_shape=jax.ShapeDtypeStruct((m, d), x.dtype),
        grid=grid,
        in_specs=[
            pl.BlockSpec((bm, d), lambda i: (i, 0)),        # x row tile (streamed)
            pl.BlockSpec((d, 2 * d), lambda i: (0, 0)),     # fused weights (resident)
            pl.BlockSpec((1, 2 * d), lambda i: (0, 0)),     # fused bias (resident)
        ],
        out_specs=pl.BlockSpec((bm, d), lambda i: (i, 0)),
        compiler_params=pltpu.CompilerParams(
            dimension_semantics=("parallel",)),
    )(xm, w_fused, b_fused)

    return out.reshape(orig_shape)


# ----------------------------------------------------------------------------
# Pure-JAX reference (same math as the PyTorch module) for correctness check.
# ----------------------------------------------------------------------------
def ref_highway(x, w_proj, b_proj, w_trans, b_trans):
    proj_result = jnp.maximum(x @ w_proj.T + b_proj, 0.0)
    proj_gate = jax.nn.sigmoid(x @ w_trans.T + b_trans)
    return proj_gate * proj_result + (1.0 - proj_gate) * x


# ----------------------------------------------------------------------------
# Deterministic PyTorch-style init: nn.Linear uniform(-1/sqrt(D), 1/sqrt(D)),
# transform.bias filled with -2.0.
# ----------------------------------------------------------------------------
def init_params(key, d):
    bound = 1.0 / math.sqrt(d)
    k1, k2, k3, _ = jax.random.split(key, 4)
    w_proj = jax.random.uniform(k1, (d, d), jnp.float32, -bound, bound)
    b_proj = jax.random.uniform(k2, (d,), jnp.float32, -bound, bound)
    w_trans = jax.random.uniform(k3, (d, d), jnp.float32, -bound, bound)
    b_trans = jnp.full((d,), -2.0, jnp.float32)           # transform.bias.fill_(-2.0)
    return w_proj, b_proj, w_trans, b_trans


def fuse_params(w_proj, b_proj, w_trans, b_trans):
    # (D, 2D) = [W_proj.T | W_trans.T]  stored bf16 for the MXU;
    # (1, 2D) = [b_proj  | b_trans ]    kept f32 (added after f32 accumulation).
    w_fused = jnp.concatenate([w_proj.T, w_trans.T], axis=1).astype(jnp.bfloat16)
    b_fused = jnp.concatenate([b_proj, b_trans])[None, :].astype(jnp.float32)
    return w_fused, b_fused


if __name__ == "__main__":
    B, T, D = 2, 16, 128     # input (batch, seq, input_size); Linear acts on last dim

    key = jax.random.PRNGKey(0)
    key, kx = jax.random.split(key)
    x = jax.random.normal(kx, (B, T, D), jnp.float32)

    w_proj, b_proj, w_trans, b_trans = init_params(key, D)
    w_fused, b_fused = fuse_params(w_proj, b_proj, w_trans, b_trans)

    out = highway_forward(x, w_fused, b_fused)
    out = jax.block_until_ready(out)

    assert out.shape == x.shape
    assert out.dtype == x.dtype

    ref = ref_highway(x, w_proj, b_proj, w_trans, b_trans)
    # bf16 MXU operands with f32 accumulation -> relaxed tolerance vs f32 reference.
    assert jnp.allclose(out, ref, atol=2e-2, rtol=2e-2), float(
        jnp.max(jnp.abs(out - ref)))

    print("KERNEL_OK")
</pallas_src>

<mosaic_0001>
module attributes {stable_mosaic.version = 11 : i64} {
  func.func @highway_kernel(%arg0: i32, %arg1: memref<32x128xf32, #tpu.memory_space<vmem>>, %arg2: memref<128x256xbf16, #tpu.memory_space<vmem>>, %arg3: memref<1x256xf32, #tpu.memory_space<vmem>>, %arg4: memref<32x128xf32, #tpu.memory_space<vmem>>) attributes {dimension_semantics = [#tpu.dimension_semantics<parallel>], iteration_bounds = array<i64: 1>, scalar_prefetch = 0 : i64, scratch_operands = 0 : i64, tpu.core_type = #tpu.core_type<tc>, window_params = [{transform_indices = @transform_0, window_bounds = array<i64: 32, 128>}, {pipeline_mode = #tpu.pipeline_mode<synchronous>, transform_indices = @transform_1, window_bounds = array<i64: 128, 256>}, {pipeline_mode = #tpu.pipeline_mode<synchronous>, transform_indices = @transform_2, window_bounds = array<i64: 1, 256>}, {transform_indices = @transform_3, window_bounds = array<i64: 32, 128>}]} {
    %c0 = arith.constant 0 : index
    %c0_0 = arith.constant 0 : index
    %0 = vector.load %arg1[%c0, %c0_0] : memref<32x128xf32, #tpu.memory_space<vmem>>, vector<32x128xf32>
    %1 = arith.truncf %0 : vector<32x128xf32> to vector<32x128xbf16>
    %c0_1 = arith.constant 0 : index
    %c0_2 = arith.constant 0 : index
    %2 = vector.load %arg2[%c0_1, %c0_2] : memref<128x256xbf16, #tpu.memory_space<vmem>>, vector<128x256xbf16>
    %cst = arith.constant dense<0.000000e+00> : vector<32x256xf32>
    %3 = tpu.matmul %1, %2, %cst {dimension_numbers = #tpu.dot_dimension_numbers<[1], [0], [0], [1], [0, 0, 1, 1], [], []>} : vector<32x128xbf16>, vector<128x256xbf16>, vector<32x256xf32> -> vector<32x256xf32>
    %c0_3 = arith.constant 0 : index
    %c0_4 = arith.constant 0 : index
    %4 = vector.load %arg3[%c0_3, %c0_4] : memref<1x256xf32, #tpu.memory_space<vmem>>, vector<1x256xf32>
    %5 = vector.broadcast %4 : vector<1x256xf32> to vector<32x256xf32>
    %6 = arith.addf %3, %5 : vector<32x256xf32>
    %7 = vector.extract_strided_slice %6 {offsets = [0, 0], sizes = [32, 128], strides = [1, 1]} : vector<32x256xf32> to vector<32x128xf32>
    %cst_5 = arith.constant 0.000000e+00 : f32
    %8 = vector.broadcast %cst_5 : f32 to vector<32x128xf32>
    %9 = arith.maximumf %7, %8 : vector<32x128xf32>
    %10 = vector.extract_strided_slice %6 {offsets = [0, 128], sizes = [32, 128], strides = [1, 1]} : vector<32x256xf32> to vector<32x128xf32>
    %11 = arith.negf %10 : vector<32x128xf32>
    %12 = math.exp %11 : vector<32x128xf32>
    %cst_6 = arith.constant 1.000000e+00 : f32
    %13 = vector.broadcast %cst_6 : f32 to vector<32x128xf32>
    %14 = arith.addf %13, %12 : vector<32x128xf32>
    %15 = arith.divf %13, %14 : vector<32x128xf32>
    %16 = arith.subf %9, %0 : vector<32x128xf32>
    %17 = arith.mulf %15, %16 : vector<32x128xf32>
    %18 = arith.addf %0, %17 : vector<32x128xf32>
    %c0_7 = arith.constant 0 : index
    %c0_8 = arith.constant 0 : index
    %19 = vector.load %arg4[%c0_7, %c0_8] : memref<32x128xf32, #tpu.memory_space<vmem>>, vector<32x128xf32>
    tpu.vector_store %arg4[%c0_7, %c0_8], %18 {strides = array<i32>} : memref<32x128xf32, #tpu.memory_space<vmem>>, vector<32x128xf32>,
    return
  }
  func.func @transform_0(%arg0: i32) -> (i32, i32) {
    %c0_i32 = arith.constant 0 : i32
    %c0_i32_0 = arith.constant 0 : i32
    return %arg0, %c0_i32 : i32, i32
  }
  func.func @transform_1(%arg0: i32) -> (i32, i32) {
    %c0_i32 = arith.constant 0 : i32
    %c0_i32_0 = arith.constant 0 : i32
    %c0_i32_1 = arith.constant 0 : i32
    return %c0_i32, %c0_i32_0 : i32, i32
  }
  func.func @transform_2(%arg0: i32) -> (i32, i32) {
    %c0_i32 = arith.constant 0 : i32
    %c0_i32_0 = arith.constant 0 : i32
    %c0_i32_1 = arith.constant 0 : i32
    return %c0_i32, %c0_i32_0 : i32, i32
  }
  func.func @transform_3(%arg0: i32) -> (i32, i32) {
    %c0_i32 = arith.constant 0 : i32
    %c0_i32_0 = arith.constant 0 : i32
    return %arg0, %c0_i32 : i32, i32
  }
}

</mosaic_0001>

<bundles_post_ra>
// kernel: tpu_custom_call.1
= control target key start
LH: loop header
LB: loop body
LE: loop exit
PB: predicated region body
PF: predicated region fallthrough
CT: control target
= control target key end

     0   :  { %8 = vsyncpa [#allocation3], 0  ;;  %s521_s0 = inlined_call_operand.hbm [shape: f32[32,128], index: 0, kind: input, shape index: {}]   ;;  %s522_s1 = inlined_call_operand.hbm [shape: bf16[128,256], index: 1, kind: input, shape index: {}]   ;;  %s523_s2 = inlined_call_operand.vmem [shape: f32[1,256], index: 2, kind: input, shape index: {}]   ;;  %s524_s3 = inlined_call_operand.hbm [shape: f32[32,128], index: 3, kind: output, shape index: {}]  }
   0x1   :  { %9 = vsyncpa [#allocation6], 0 }
   0x2   :  { %10 = vsyncpa [#allocation4], 0  ;;  %s427_s12 = smov [#allocation2]   ;;  %s355_s16 = scalar_lea.hbm %s521_s0, 512 }
   0x3   :  { %s16_s13 = sshll.u32 %s427_s12, 4  ;;  %p356_p0 = scmp.ne.s32.totalorder %s521_s0, %s355_s16  ;;  %s17_s13 = int_to_ptr.vmem [resolvable:$true] %s16_s13 }
   0x4   :  { %p359_p1 = scmp.lt.u32.totalorder %s355_s16, %s521_s0 }
   0x6   :  { %p361_p2 = pnand %p359_p1, %p356_p0 }
   0x8   :  { %364 = shalt.err (!%p361_p2)
}
   0x9   :  { %s365_s21 = scalar_lea.vmem %s17_s13, 512  ;;  %p370_p4 = scmp.lt.s32.totalorder %s17_s13, %s17_s13 }
   0xa   :  { %p366_p3 = scmp.ne.s32.totalorder %s17_s13, %s365_s21  ;;  %p371_p5 = scmp.lt.s32.totalorder %s365_s21, %s365_s21 }
   0xc   :  { %p372_p6 = por %p371_p5, %p370_p4 }
   0xe   :  { %p373_p7 = pnand %p372_p6, %p366_p3 }
  0x10   :  { %376 = shalt.err (!%p373_p7)
}
  0x11   :  { %s428_s22 = smov 128   ;;  %s429_s23 = smov 8  }
  0x12   :  { %22 = dma.hbm_to_vmem [thread:$0]  %s521_s0, 512, %s17_s13, [#allocation3], %s428_s22, %s428_s22, %s429_s23  }
  0x13   :  { %s430_s26 = smov [#allocation5]   ;;  %s377_s30 = scalar_lea.hbm %s522_s1, 2048 }
  0x14   :  { %s28_s27 = sshll.u32 %s430_s26, 4  ;;  %p378_p8 = scmp.ne.s32.totalorder %s522_s1, %s377_s30  ;;  %s29_s27 = int_to_ptr.vmem [resolvable:$true] %s28_s27 }
  0x15   :  { %p381_p9 = scmp.lt.u32.totalorder %s377_s30, %s522_s1 }
  0x17   :  { %p383_p10 = pnand %p381_p9, %p378_p8 }
  0x19   :  { %386 = shalt.err (!%p383_p10)
}
  0x1a   :  { %s387_s8 = scalar_lea.vmem %s29_s27, 2048  ;;  %p392_p12 = scmp.lt.s32.totalorder %s29_s27, %s29_s27 }
  0x1b   :  { %p388_p11 = scmp.ne.s32.totalorder %s29_s27, %s387_s8  ;;  %p393_p13 = scmp.lt.s32.totalorder %s387_s8, %s387_s8 }
  0x1d   :  { %p394_p0 = por %p393_p13, %p392_p12 }
  0x1f   :  { %p395_p1 = pnand %p394_p0, %p388_p11 }
  0x21   :  { %398 = shalt.err (!%p395_p1)
}
  0x22   :  { %34 = dma.hbm_to_vmem [thread:$0]  %s522_s1, 2048, %s29_s27, [#allocation6], %s428_s22, %s428_s22, %s429_s23  }
  0x23   :  { %421 = dma.done.wait [#allocation3], 512  }
  0x24   :  { %422 = vsyncadd [#allocation3], 4294966784 }
  0x25   :  { %423 = dma.done.wait [#allocation6], 2048  }
  0x26   :  { %424 = vsyncadd [#allocation6], 4294965248  ;;  %v431_v0 = vmov 0   ;;  %v315_v1 = vld [vmem:[#allocation5 + $0x4] ss:$8 sps:$4 sm:$0xff]   ;;  %v487_v19 = vld [vmem:[#allocation2 + $0x10] sm:$0xff]  ;;  %v68_v23 = vlaneseq }
  0x27   :  { %190 = vmatprep.mubr.bf16.mxu0 %v431_v0  ;;  %200 = vmatprep.mubr.bf16.mxu1 %v431_v0  ;;  %v317_v2 = vld [vmem:[#allocation5] ss:$8 sps:$4 sm:$0xff]   ;;  %v318_v3 = vld [vmem:[#allocation5 + $0x14] ss:$8 sps:$4 sm:$0xff]   ;;  %v320_v4 = vld [vmem:[#allocation5 + $0x10] ss:$8 sps:$4 sm:$0xff]  }
  0x28   :  { %158 = vmatprep.subr.bf16.mxu0 %v315_v1  ;;  %293 = vmatprep.subr.bf16.mxu1 %v315_v1  ;;  %v321_v5 = vld [vmem:[#allocation5 + $0x24] ss:$8 sps:$4 sm:$0xff]   ;;  %v323_v6 = vld [vmem:[#allocation5 + $0x20] ss:$8 sps:$4 sm:$0xff]   ;;  %v324_v7 = vld [vmem:[#allocation5 + $0x34] ss:$8 sps:$4 sm:$0xff]  }
  0x29   :  { %159 = vmatpush1.bf16.msra.mxu0 %v317_v2  ;;  %301 = vmatpush1.bf16.msra.mxu1 %v317_v2  ;;  %v326_v8 = vld [vmem:[#allocation5 + $0x30] ss:$8 sps:$4 sm:$0xff]   ;;  %v327_v9 = vld [vmem:[#allocation5 + $0x44] ss:$8 sps:$4 sm:$0xff]   ;;  %v329_v10 = vld [vmem:[#allocation5 + $0x40] ss:$8 sps:$4 sm:$0xff]  }
  0x2a   :  { %160 = vmatprep.subr.bf16.mxu0 %v318_v3  ;;  %294 = vmatprep.subr.bf16.mxu1 %v318_v3  ;;  %v330_v11 = vld [vmem:[#allocation5 + $0x54] ss:$8 sps:$4 sm:$0xff]   ;;  %v332_v12 = vld [vmem:[#allocation5 + $0x50] ss:$8 sps:$4 sm:$0xff]   ;;  %v333_v13 = vld [vmem:[#allocation5 + $0x64] ss:$8 sps:$4 sm:$0xff]  }
  0x2b   :  { %v335_v14 = vld [vmem:[#allocation5 + $0x60] ss:$8 sps:$4 sm:$0xff]   ;;  %v336_v15 = vld [vmem:[#allocation5 + $0x74] ss:$8 sps:$4 sm:$0xff]   ;;  %v338_v16 = vld [vmem:[#allocation5 + $0x70] ss:$8 sps:$4 sm:$0xff]  }
  0x2c   :  { %v483_v17 = vld [vmem:[#allocation2] sm:$0xff]  ;;  %v485_v18 = vld [vmem:[#allocation2 + $0x8] sm:$0xff]  ;;  %v489_v20 = vld [vmem:[#allocation2 + $0x18] sm:$0xff]  ;;  %v69_v24 = vshrl.u32 %v68_v23, 7 }
  0x2d   :  { %161 = vmatpush1.bf16.msra.mxu0 %v320_v4  ;;  %302 = vmatpush1.bf16.msra.mxu1 %v320_v4  ;;  %v48_v21 = vpack.c.bf16 %v485_v18, %v483_v17  ;;  %v49_v22 = vpack.c.bf16 %v489_v20, %v487_v19  ;;  %v66_v26 = vld [vmem:[%s523_s2] sm:$0x3]  ;;  %s432_s2 = smov [#allocation7]  }
  0x2e   :  { %162 = vmatprep.subr.bf16.mxu0 %v321_v5  ;;  %295 = vmatprep.subr.bf16.mxu1 %v321_v5  ;;  %v74_v25 = vsub.s32 1, %v69_v24  ;;  %v70_v44 = vsub.s32 0, %v69_v24  ;;  %s260_s11 = sshll.u32 %s432_s2, 4  ;;  %s261_s11 = int_to_ptr.vmem [resolvable:$true] %s260_s11 }
  0x2f   :  { %s399_s12 = scalar_lea.vmem %s261_s11, 512  ;;  %p404_p3 = scmp.lt.s32.totalorder %s261_s11, %s261_s11 }
  0x30   :  { %v75_v27 = vrot.slane %v66_v26, %v74_v25  ;;  %v71_v46 = vrot.slane %v66_v26, %v70_v44  ;;  %p400_p2 = scmp.ne.s32.totalorder %s261_s11, %s399_s12  ;;  %p405_p4 = scmp.lt.s32.totalorder %s399_s12, %s399_s12 }
  0x31   :  { %163 = vmatpush1.bf16.msra.mxu0 %v323_v6  ;;  %303 = vmatpush1.bf16.msra.mxu1 %v323_v6 }
  0x32   :  { %164 = vmatprep.subr.bf16.mxu0 %v324_v7  ;;  %296 = vmatprep.subr.bf16.mxu1 %v324_v7  ;;  %p406_p5 = por %p405_p4, %p404_p3 }
  0x34   :  { %p407_p6 = pnand %p406_p5, %p400_p2 }
  0x35   :  { %165 = vmatpush1.bf16.msra.mxu0 %v326_v8  ;;  %304 = vmatpush1.bf16.msra.mxu1 %v326_v8 }
  0x36   :  { %166 = vmatprep.subr.bf16.mxu0 %v327_v9  ;;  %297 = vmatprep.subr.bf16.mxu1 %v327_v9 }
  0x39   :  { %167 = vmatpush1.bf16.msra.mxu0 %v329_v10  ;;  %305 = vmatpush1.bf16.msra.mxu1 %v329_v10 }
  0x3a   :  { %168 = vmatprep.subr.bf16.mxu0 %v330_v11  ;;  %298 = vmatprep.subr.bf16.mxu1 %v330_v11 }
  0x3d   :  { %169 = vmatpush1.bf16.msra.mxu0 %v332_v12  ;;  %306 = vmatpush1.bf16.msra.mxu1 %v332_v12 }
  0x3e   :  { %170 = vmatprep.subr.bf16.mxu0 %v333_v13  ;;  %299 = vmatprep.subr.bf16.mxu1 %v333_v13 }
  0x41   :  { %171 = vmatpush1.bf16.msra.mxu0 %v335_v14  ;;  %307 = vmatpush1.bf16.msra.mxu1 %v335_v14 }
  0x42   :  { %172 = vmatprep.subr.bf16.mxu0 %v336_v15  ;;  %300 = vmatprep.subr.bf16.mxu1 %v336_v15 }
  0x45   :  { %173 = vmatpush1.bf16.msra.mxu0 %v338_v16  ;;  %308 = vmatpush1.bf16.msra.mxu1 %v338_v16 }
  0x48   :  { %191 = vmatmul.mubr.bf16.vlgmr.msra.gmra.mrb[0].mxu0 %v48_v21  ;;  %201 = vmatmul.mubr.bf16.vlgmr.msra.gmra.mrb[0].mxu1 %v49_v22 }
 0x11b   :  { %v192_v28 = vpop.f32.mrb[0].mxu0  ;;  %v202_v29 = vpop.f32.mrb[0].mxu1 }
 0x11c   :  { %v194_v30 = vpop.f32.mrb[1].mxu0  ;;  %v204_v31 = vpop.f32.mrb[1].mxu1  ;;  %v193_v53 = vadd.f32 %v192_v28, %v71_v46  ;;  %v203_v55 = vadd.f32 %v202_v29, %v71_v46 }
 0x11d   :  { %v195_v32 = vadd.f32 %v194_v30, %v75_v27  ;;  %v205_v33 = vadd.f32 %v204_v31, %v75_v27  ;;  %v196_v34 = vpop.f32.mrb[2].mxu0  ;;  %v206_v35 = vpop.f32.mrb[2].mxu1 }
 0x11e   :  { %v198_v36 = vpop.f32.mrb[3].mxu0  ;;  %v208_v37 = vpop.f32.mrb[3].mxu1  ;;  %v197_v56 = vadd.f32 %v196_v34, %v71_v46  ;;  %v207_v57 = vadd.f32 %v206_v35, %v71_v46  ;;  %v211_v58 = vmax.f32 %v193_v53, 0.0  ;;  %v213_v59 = vmax.f32 %v203_v55, 0.0 }
 0x11f   :  { %v289_v38 = vmul.f32 -1.442695, %v195_v32  ;;  %v291_v39 = vmul.f32 -1.442695, %v205_v33  ;;  %v199_v40 = vadd.f32 %v198_v36, %v75_v27  ;;  %v209_v41 = vadd.f32 %v208_v37, %v75_v27 }
 0x120   :  { %v212_v60 = vmax.f32 %v197_v56, 0.0  ;;  %v214_v61 = vmax.f32 %v207_v57, 0.0  ;;  %v239_v62 = vsub.f32 %v211_v58, %v483_v17  ;;  %v241_v0 = vsub.f32 %v213_v59, %v487_v19 }
 0x121   :  { %339 = vpow2.f32 %v289_v38  ;;  %v290_v42 = vmul.f32 -1.442695, %v199_v40  ;;  %v292_v43 = vmul.f32 -1.442695, %v209_v41 }
 0x122   :  { %341 = vpow2.f32 %v291_v39  ;;  %v240_v2 = vsub.f32 %v212_v60, %v485_v18  ;;  %v242_v5 = vsub.f32 %v214_v61, %v489_v20 }
 0x123   :  { %343 = vpow2.f32 %v290_v42 }
 0x124   :  { %345 = vpow2.f32 %v292_v43 }
 0x12b   :  { %v340_v45 = vpop.eup %339 }
 0x12c   :  { %v342_v47 = vpop.eup %341  ;;  %v227_v48 = vadd.f32 1.0, %v340_v45 }
 0x12d   :  { %v344_v49 = vpop.eup %343  ;;  %v229_v50 = vadd.f32 1.0, %v342_v47 }
 0x12e   :  { %v346_v51 = vpop.eup %345  ;;  %347 = vrcp.f32 %v227_v48  ;;  %v228_v52 = vadd.f32 1.0, %v344_v49 }
 0x12f   :  { %349 = vrcp.f32 %v229_v50  ;;  %v230_v54 = vadd.f32 1.0, %v346_v51 }
 0x130   :  { %351 = vrcp.f32 %v228_v52 }
 0x131   :  { %353 = vrcp.f32 %v230_v54 }
 0x138   :  { %v348_v63 = vpop.eup %347 }
 0x139   :  { %v350_v1 = vpop.eup %349  ;;  %v243_v3 = vmul.f32 %v348_v63, %v239_v62 }
 0x13a   :  { %v352_v4 = vpop.eup %351  ;;  %v245_v6 = vmul.f32 %v350_v1, %v241_v0 }
 0x13b   :  { %v354_v7 = vpop.eup %353  ;;  %v244_v8 = vmul.f32 %v352_v4, %v240_v2  ;;  %v247_v9 = vadd.f32 %v243_v3, %v483_v17 }
 0x13c   :  { %v246_v10 = vmul.f32 %v354_v7, %v242_v5  ;;  %v249_v11 = vadd.f32 %v245_v6, %v487_v19 }
 0x13d   :  { %v248_v12 = vadd.f32 %v244_v8, %v485_v18  ;;  %251 = vst [vmem:[#allocation7] sm:$0xff] %v247_v9 }
 0x13e   :  { %v250_v13 = vadd.f32 %v246_v10, %v489_v20  ;;  %253 = vst [vmem:[#allocation7 + $0x10] sm:$0xff] %v249_v11 }
 0x13f   :  { %252 = vst [vmem:[#allocation7 + $0x8] sm:$0xff] %v248_v12 }
 0x140   :  { %254 = vst [vmem:[#allocation7 + $0x18] sm:$0xff] %v250_v13 }
 0x141   :  { %410 = shalt.err (!%p407_p6)
}
 0x142   :  { %s411_s15 = scalar_lea.hbm %s524_s3, 512 }
 0x143   :  { %p412_p7 = scmp.ne.s32.totalorder %s524_s3, %s411_s15  ;;  %p415_p8 = scmp.lt.u32.totalorder %s411_s15, %s524_s3 }
 0x145   :  { %p417_p9 = pnand %p415_p8, %p412_p7 }
 0x147   :  { %420 = shalt.err (!%p417_p9)
}
 0x148   :  { %266 = dma.vmem_to_hbm [thread:$0]  %s261_s11, 512, %s524_s3, [#allocation4], %s428_s22, %s428_s22, %s429_s23  }
 0x149   :  { %425 = dma.done.wait [#allocation4], 512  }
 0x14a   :  { %426 = vsyncadd [#allocation4], 4294966784 }
 0x14b   :  { %270 = vsyncpa [#allocation3], 1 }
 0x14c   :  { %271 = vsyncpa [#allocation6], 1 }
 0x14d   :  { %272 = vsyncpa [#allocation4], 1 }

</bundles_post_ra>
